<compile_context>
chip_gen: v7x
topology: tpu7x:2x2x1
jax: 0.10.0
libtpu: 0.0.40
codegen_flags: <defaults>
</compile_context>

<pallas_src>
import functools

import jax
import jax.numpy as jnp
from jax.experimental import pallas as pl
from jax.experimental.pallas import tpu as pltpu

EPS = 1e-5                      # nn.LayerNorm default
_INV_SQRT2 = 0.7071067811865475


# ----------------------------------------------------------------------------
# Math helpers (used both in-kernel and in the pure-JAX reference).
# ----------------------------------------------------------------------------
def _gelu(x, approx):
    if approx:
        # tanh approximation -> EUP slot.  Opt-in: deviates slightly from nn.GELU().
        c = 0.7978845608028654  # sqrt(2/pi)
        return 0.5 * x * (1.0 + jnp.tanh(c * (x + 0.044715 * x * x * x)))
    return 0.5 * x * (1.0 + jax.lax.erf(x * _INV_SQRT2))


def _layernorm(h, gamma, beta, f_true, mask):
    """LayerNorm over the last axis; stats use only the first f_true lanes.

    Assumes padded lanes of `h` are exactly zero (guaranteed by zero-padded
    weights / biases from prepare_params)."""
    inv_f = 1.0 / f_true
    mean = jnp.sum(h, axis=-1, keepdims=True) * inv_f
    centered = h - mean
    if mask is not None:
        centered = jnp.where(mask, centered, 0.0)
    var = jnp.sum(centered * centered, axis=-1, keepdims=True) * inv_f
    inv = jax.lax.rsqrt(var + EPS)
    return centered * inv * gamma + beta


def _lane_mask(f_pad, f_true):
    if f_pad == f_true:
        return None
    return jax.lax.broadcasted_iota(jnp.int32, (1, f_pad), 1) < f_true


# ----------------------------------------------------------------------------
# Kernels.
# ----------------------------------------------------------------------------
def _fused_kernel(x_ref, w1_ref, w2_ref, vec_ref, o_ref, *,
                  f_true, n_sub, approx_gelu):
    f_pad = x_ref.shape[-1]
    mask = _lane_mask(f_pad, f_true)
    b1, g1, be1 = vec_ref[0:1, :], vec_ref[1:2, :], vec_ref[2:3, :]
    b2, g2, be2 = vec_ref[3:4, :], vec_ref[4:5, :], vec_ref[5:6, :]

    sub = x_ref.shape[0] // n_sub
    # Unrolled independent sub-blocks: MXU work of sub-block s+1 can overlap the
    # VPU LayerNorm/GELU epilogue of sub-block s.
    for s in range(n_sub):
        r0, r1 = s * sub, (s + 1) * sub
        x = x_ref[r0:r1, :]
        h = jnp.dot(x.astype(w1_ref.dtype), w1_ref[...],
                    preferred_element_type=jnp.float32) + b1
        h = _layernorm(h, g1, be1, f_true, mask)
        h = _gelu(h, approx_gelu)                     # Dropout = identity (eval)
        h = jnp.dot(h.astype(w2_ref.dtype), w2_ref[...],
                    preferred_element_type=jnp.float32) + b2
        h = _layernorm(h, g2, be2, f_true, mask)
        o_ref[r0:r1, :] = _gelu(h + x.astype(jnp.float32),
                                approx_gelu).astype(o_ref.dtype)


def _half1_kernel(x_ref, w1_ref, vec_ref, h_ref, *, f_true, n_sub, approx_gelu):
    # h = GELU(LN1(x @ W1 + b1))
    f_pad = x_ref.shape[-1]
    mask = _lane_mask(f_pad, f_true)
    b1, g1, be1 = vec_ref[0:1, :], vec_ref[1:2, :], vec_ref[2:3, :]
    sub = x_ref.shape[0] // n_sub
    for s in range(n_sub):
        r0, r1 = s * sub, (s + 1) * sub
        h = jnp.dot(x_ref[r0:r1, :].astype(w1_ref.dtype), w1_ref[...],
                    preferred_element_type=jnp.float32) + b1
        h = _layernorm(h, g1, be1, f_true, mask)
        h = _gelu(h, approx_gelu)                     # Dropout = identity (eval)
        h_ref[r0:r1, :] = h.astype(h_ref.dtype)


def _half2_kernel(x_ref, h_ref, w2_ref, vec_ref, o_ref, *,
                  f_true, n_sub, approx_gelu):
    # out = GELU(LN2(h @ W2 + b2) + x)
    f_pad = x_ref.shape[-1]
    mask = _lane_mask(f_pad, f_true)
    b2, g2, be2 = vec_ref[3:4, :], vec_ref[4:5, :], vec_ref[5:6, :]
    sub = x_ref.shape[0] // n_sub
    for s in range(n_sub):
        r0, r1 = s * sub, (s + 1) * sub
        t = jnp.dot(h_ref[r0:r1, :].astype(w2_ref.dtype), w2_ref[...],
                    preferred_element_type=jnp.float32) + b2
        t = _layernorm(t, g2, be2, f_true, mask)
        o_ref[r0:r1, :] = _gelu(t + x_ref[r0:r1, :].astype(jnp.float32),
                                approx_gelu).astype(o_ref.dtype)


# ----------------------------------------------------------------------------
# Wrapper.
# ----------------------------------------------------------------------------
def _round_up(n, m):
    return ((n + m - 1) // m) * m


def _sublane_multiple(dtype):
    # Packed sublane tile: 8 for 4-byte, 16 for 2-byte, 32 for 1-byte dtypes.
    return {4: 8, 2: 16, 1: 32}.get(jnp.dtype(dtype).itemsize, 8)


def _vmem_cap_bytes():
    try:
        phys = pltpu.get_tpu_info().vmem_capacity_bytes
    except Exception:
        phys = 64 * 1024 * 1024   # conservative fallback fits every generation
    return int(phys * 0.85)       # ~10-15% headroom


def prepare_params(params, compute_dtype=jnp.bfloat16):
    """Pad the feature axis to a multiple of 128 (lane-dense), cast the two FxF
    weights to compute_dtype (bf16 by default -> native MXU rate, half the VMEM
    footprint) and pack the six (1,F) vectors into one (8, Fp) f32 operand.
    Call ONCE outside the hot path so padding/casting never re-runs per call."""
    w1, b1, g1, be1, w2, b2, g2, be2 = params
    F = w1.shape[0]
    Fp = _round_up(F, 128)
    pf = Fp - F

    def pad_mat(w):
        w = w.astype(compute_dtype)
        return jnp.pad(w, ((0, pf), (0, pf))) if pf else w

    def pad_vec(v):
        v = jnp.asarray(v, jnp.float32).reshape(1, F)
        return jnp.pad(v, ((0, 0), (0, pf))) if pf else v

    vecs = jnp.concatenate(
        [pad_vec(b1), pad_vec(g1), pad_vec(be1),
         pad_vec(b2), pad_vec(g2), pad_vec(be2),
         jnp.zeros((2, Fp), jnp.float32)], axis=0)          # (8, Fp)
    return pad_mat(w1), pad_mat(w2), vecs


@functools.partial(jax.jit,
                   static_argnames=("row_tile", "approx_gelu", "force_split"))
def residual_block(x, prepared, *, row_tile=None, approx_gelu=False,
                   force_split=False):
    """x: (..., F).  `prepared` comes from prepare_params()."""
    w1p, w2p, vecs = prepared
    orig_shape = x.shape
    F = orig_shape[-1]
    Fp = w1p.shape[0]
    assert w1p.shape == (Fp, Fp) and w2p.shape == (Fp, Fp) and Fp >= F

    x2 = x.reshape(-1, F)
    R = x2.shape[0]

    cap = _vmem_cap_bytes()
    sub_mult = _sublane_multiple(x.dtype)
    if row_tile is None:
        # 512-row tiles on 128 MiB parts (v5e/v6e), 256 on v7x (64 MiB/TC).
        row_tile = 512 if cap >= 96 * 1024 * 1024 else 256
    rt = _round_up(min(row_tile, _round_up(R, sub_mult)), sub_mult)

    wbytes = jnp.dtype(w1p.dtype).itemsize
    xbytes = jnp.dtype(x.dtype).itemsize

    def _budget(rt_, n_resident_weights):
        weights = n_resident_weights * Fp * Fp * wbytes + 8 * Fp * 4
        tiles = 2 * rt_ * Fp * (2 * xbytes + wbytes)   # double-buffered x/h/out
        scratch = 6 * rt_ * Fp * 4 + (2 << 20)         # f32 intermediates headroom
        return weights + tiles + scratch

    # Both weights resident (fused) if they fit; otherwise split the block into
    # two calls with one resident weight each.
    use_split = force_split or _budget(rt, 2) > cap
    if use_split:
        while rt > 4 * sub_mult and _budget(rt, 1) > cap:
            rt = _round_up(max(rt // 2, sub_mult), sub_mult)
        # TODO(synk): if a single FxF weight still exceeds one TC's VMEM, stream
        # it in K-blocks with pltpu.emit_pipeline instead of keeping it resident.

    Rp = _round_up(R, rt)
    xp = x2
    if Rp != R or Fp != F:
        xp = jnp.pad(x2, ((0, Rp - R), (0, Fp - F)))

    n_sub = 2 if (rt >= 256 and rt % (2 * sub_mult) == 0) else 1

    row_spec = pl.BlockSpec((rt, Fp), lambda i: (i, 0))
    res_spec = pl.BlockSpec(memory_space=pltpu.MemorySpace.VMEM)  # loop-invariant
    cparams = pltpu.CompilerParams(
        dimension_semantics=("parallel",),      # rows split across TCs (megacore)
        vmem_limit_bytes=cap)
    grid = (Rp // rt,)

    if not use_split:
        out = pl.pallas_call(
            functools.partial(_fused_kernel, f_true=F, n_sub=n_sub,
                              approx_gelu=approx_gelu),
            out_shape=jax.ShapeDtypeStruct((Rp, Fp), x.dtype),
            grid_spec=pltpu.PrefetchScalarGridSpec(
                num_scalar_prefetch=0, grid=grid,
                in_specs=[row_spec, res_spec, res_spec, res_spec],
                out_specs=row_spec),
            compiler_params=cparams,
        )(xp, w1p, w2p, vecs)
    else:
        h = pl.pallas_call(
            functools.partial(_half1_kernel, f_true=F, n_sub=n_sub,
                              approx_gelu=approx_gelu),
            out_shape=jax.ShapeDtypeStruct((Rp, Fp), w1p.dtype),
            grid_spec=pltpu.PrefetchScalarGridSpec(
                num_scalar_prefetch=0, grid=grid,
                in_specs=[row_spec, res_spec, res_spec],
                out_specs=row_spec),
            compiler_params=cparams,
        )(xp, w1p, vecs)
        out = pl.pallas_call(
            functools.partial(_half2_kernel, f_true=F, n_sub=n_sub,
                              approx_gelu=approx_gelu),
            out_shape=jax.ShapeDtypeStruct((Rp, Fp), x.dtype),
            grid_spec=pltpu.PrefetchScalarGridSpec(
                num_scalar_prefetch=0, grid=grid,
                in_specs=[row_spec, row_spec, res_spec, res_spec],
                out_specs=row_spec),
            compiler_params=cparams,
        )(xp, h, w2p, vecs)

    if Rp != R or Fp != F:
        out = out[:R, :F]
    return out.reshape(orig_shape)


# ----------------------------------------------------------------------------
# Parameter init + pure-JAX reference (mirrors PyTorch eval-mode forward).
# ----------------------------------------------------------------------------
def init_params(key, in_features, dtype=jnp.float32):
    """Linear weights stored as (in, out), i.e. W = W_pt.T, so the kernel
    computes x @ W (equivalent to PyTorch's x @ W_pt.T)."""
    k1, k2, k3, k4 = jax.random.split(key, 4)
    bound = 1.0 / (in_features ** 0.5)
    w1 = jax.random.uniform(k1, (in_features, in_features), dtype, -bound, bound)
    b1 = jax.random.uniform(k2, (1, in_features), dtype, -bound, bound)
    w2 = jax.random.uniform(k3, (in_features, in_features), dtype, -bound, bound)
    b2 = jax.random.uniform(k4, (1, in_features), dtype, -bound, bound)
    g1 = jnp.ones((1, in_features), dtype)    # LayerNorm weight init = 1
    be1 = jnp.zeros((1, in_features), dtype)  # LayerNorm bias init = 0
    g2 = jnp.ones((1, in_features), dtype)
    be2 = jnp.zeros((1, in_features), dtype)
    return (w1, b1, g1, be1, w2, b2, g2, be2)


def _reference(x, params):
    w1, b1, g1, be1, w2, b2, g2, be2 = params

    def ln(h, g, b):
        mean = h.mean(-1, keepdims=True)
        var = ((h - mean) ** 2).mean(-1, keepdims=True)
        return (h - mean) * jax.lax.rsqrt(var + EPS) * g + b

    h = x @ w1 + b1
    h = ln(h, g1, be1)
    h = _gelu(h, False)
    h = h @ w2 + b2
    h = ln(h, g2, be2)
    return _gelu(h + x, False)


if __name__ == "__main__":
    key = jax.random.PRNGKey(0)
    kx, kp, kx2, kp2 = jax.random.split(key, 4)

    # Lane-dense case: hidden is a multiple of 128.
    batch, seq, hidden = 2, 8, 128
    x = jax.random.normal(kx, (batch, seq, hidden), dtype=jnp.float32)
    params = init_params(kp, hidden)
    ref = _reference(x.reshape(-1, hidden), params).reshape(x.shape)

    # f32 compute path (tight tolerance vs. the f32 reference).
    prep_f32 = prepare_params(params, compute_dtype=jnp.float32)
    out_f32 = jax.block_until_ready(residual_block(x, prep_f32))
    assert out_f32.shape == x.shape and out_f32.dtype == x.dtype
    assert jnp.allclose(out_f32, ref, atol=1e-4, rtol=1e-4), "mismatch (f32)"

    # Default bf16-MXU path (f32 accumulation) -> looser tolerance.
    prep_bf16 = prepare_params(params)   # compute_dtype=bf16
    out_bf16 = jax.block_until_ready(residual_block(x, prep_bf16))
    assert out_bf16.shape == x.shape and out_bf16.dtype == x.dtype
    assert jnp.allclose(out_bf16, ref, atol=5e-2, rtol=5e-2), "mismatch (bf16)"

    # Ragged feature count (F % 128 != 0): exercises padding + masked LayerNorm.
    hidden2 = 32
    x2 = jax.random.normal(kx2, (batch, seq, hidden2), dtype=jnp.float32)
    params2 = init_params(kp2, hidden2)
    ref2 = _reference(x2.reshape(-1, hidden2), params2).reshape(x2.shape)
    prep2 = prepare_params(params2, compute_dtype=jnp.float32)
    out2 = jax.block_until_ready(residual_block(x2, prep2))
    assert jnp.allclose(out2, ref2, atol=1e-4, rtol=1e-4), "mismatch (hidden=32)"

    # Exercise the non-resident (two-call split) fallback path as well.
    out2s = jax.block_until_ready(residual_block(x2, prep2, force_split=True))
    assert jnp.allclose(out2s, ref2, atol=1e-4, rtol=1e-4), "mismatch (split path)"

    print("KERNEL_OK")
</pallas_src>

<mosaic_0001>
module attributes {stable_mosaic.version = 11 : i64} {
  func.func @_fused_kernel(%arg0: i32, %arg1: memref<16x128xf32, #tpu.memory_space<vmem>>, %arg2: memref<128x128xf32, #tpu.memory_space<vmem>>, %arg3: memref<128x128xf32, #tpu.memory_space<vmem>>, %arg4: memref<8x128xf32, #tpu.memory_space<vmem>>, %arg5: memref<16x128xf32, #tpu.memory_space<vmem>>) attributes {dimension_semantics = [#tpu.dimension_semantics<parallel>], iteration_bounds = array<i64: 1>, scalar_prefetch = 0 : i64, scratch_operands = 0 : i64, tpu.core_type = #tpu.core_type<tc>, window_params = [{transform_indices = @transform_0, window_bounds = array<i64: 16, 128>}, {pipeline_mode = #tpu.pipeline_mode<synchronous>, transform_indices = @transform_1, window_bounds = array<i64: 128, 128>}, {pipeline_mode = #tpu.pipeline_mode<synchronous>, transform_indices = @transform_2, window_bounds = array<i64: 128, 128>}, {pipeline_mode = #tpu.pipeline_mode<synchronous>, transform_indices = @transform_3, window_bounds = array<i64: 8, 128>}, {transform_indices = @transform_4, window_bounds = array<i64: 16, 128>}]} {
    %c0 = arith.constant 0 : index
    %c0_0 = arith.constant 0 : index
    %0 = vector.load %arg4[%c0, %c0_0] : memref<8x128xf32, #tpu.memory_space<vmem>>, vector<1x128xf32>
    %c1 = arith.constant 1 : index
    %c0_1 = arith.constant 0 : index
    %1 = vector.load %arg4[%c1, %c0_1] : memref<8x128xf32, #tpu.memory_space<vmem>>, vector<1x128xf32>
    %c2 = arith.constant 2 : index
    %c0_2 = arith.constant 0 : index
    %2 = vector.load %arg4[%c2, %c0_2] : memref<8x128xf32, #tpu.memory_space<vmem>>, vector<1x128xf32>
    %c3 = arith.constant 3 : index
    %c0_3 = arith.constant 0 : index
    %3 = vector.load %arg4[%c3, %c0_3] : memref<8x128xf32, #tpu.memory_space<vmem>>, vector<1x128xf32>
    %c4 = arith.constant 4 : index
    %c0_4 = arith.constant 0 : index
    %4 = vector.load %arg4[%c4, %c0_4] : memref<8x128xf32, #tpu.memory_space<vmem>>, vector<1x128xf32>
    %c5 = arith.constant 5 : index
    %c0_5 = arith.constant 0 : index
    %5 = vector.load %arg4[%c5, %c0_5] : memref<8x128xf32, #tpu.memory_space<vmem>>, vector<1x128xf32>
    %c0_6 = arith.constant 0 : index
    %c0_7 = arith.constant 0 : index
    %6 = vector.load %arg1[%c0_6, %c0_7] : memref<16x128xf32, #tpu.memory_space<vmem>>, vector<16x128xf32>
    %c0_8 = arith.constant 0 : index
    %c0_9 = arith.constant 0 : index
    %7 = vector.load %arg2[%c0_8, %c0_9] : memref<128x128xf32, #tpu.memory_space<vmem>>, vector<128x128xf32>
    %cst = arith.constant dense<0.000000e+00> : vector<16x128xf32>
    %8 = tpu.matmul %6, %7, %cst {dimension_numbers = #tpu.dot_dimension_numbers<[1], [0], [0], [1], [0, 0, 1, 1], [], []>} : vector<16x128xf32>, vector<128x128xf32>, vector<16x128xf32> -> vector<16x128xf32>
    %9 = vector.broadcast %0 : vector<1x128xf32> to vector<16x128xf32>
    %10 = arith.addf %8, %9 : vector<16x128xf32>
    %cst_10 = arith.constant dense<0.000000e+00> : vector<16xf32>
    %11 = vector.multi_reduction <add>, %10, %cst_10 [1] : vector<16x128xf32> to vector<16xf32>
    %12 = vector.shape_cast %11 : vector<16xf32> to vector<16x1xf32>
    %cst_11 = arith.constant 7.812500e-03 : f32
    %13 = vector.broadcast %cst_11 : f32 to vector<16x1xf32>
    %14 = arith.mulf %12, %13 : vector<16x1xf32>
    %15 = vector.broadcast %14 : vector<16x1xf32> to vector<16x128xf32>
    %16 = arith.subf %10, %15 : vector<16x128xf32>
    %17 = arith.mulf %16, %16 : vector<16x128xf32>
    %cst_12 = arith.constant dense<0.000000e+00> : vector<16xf32>
    %18 = vector.multi_reduction <add>, %17, %cst_12 [1] : vector<16x128xf32> to vector<16xf32>
    %19 = vector.shape_cast %18 : vector<16xf32> to vector<16x1xf32>
    %cst_13 = arith.constant 7.812500e-03 : f32
    %20 = vector.broadcast %cst_13 : f32 to vector<16x1xf32>
    %21 = arith.mulf %19, %20 : vector<16x1xf32>
    %cst_14 = arith.constant 9.99999974E-6 : f32
    %22 = vector.broadcast %cst_14 : f32 to vector<16x1xf32>
    %23 = arith.addf %21, %22 : vector<16x1xf32>
    %24 = math.rsqrt %23 : vector<16x1xf32>
    %25 = vector.broadcast %24 : vector<16x1xf32> to vector<16x128xf32>
    %26 = arith.mulf %16, %25 : vector<16x128xf32>
    %27 = vector.broadcast %1 : vector<1x128xf32> to vector<16x128xf32>
    %28 = arith.mulf %26, %27 : vector<16x128xf32>
    %29 = vector.broadcast %2 : vector<1x128xf32> to vector<16x128xf32>
    %30 = arith.addf %28, %29 : vector<16x128xf32>
    %cst_15 = arith.constant 5.000000e-01 : f32
    %31 = vector.broadcast %cst_15 : f32 to vector<16x128xf32>
    %32 = arith.mulf %31, %30 : vector<16x128xf32>
    %cst_16 = arith.constant 0.707106769 : f32
    %33 = vector.broadcast %cst_16 : f32 to vector<16x128xf32>
    %34 = arith.mulf %30, %33 : vector<16x128xf32>
    %35 = math.erf %34 : vector<16x128xf32>
    %cst_17 = arith.constant 1.000000e+00 : f32
    %36 = vector.broadcast %cst_17 : f32 to vector<16x128xf32>
    %37 = arith.addf %36, %35 : vector<16x128xf32>
    %38 = arith.mulf %32, %37 : vector<16x128xf32>
    %c0_18 = arith.constant 0 : index
    %c0_19 = arith.constant 0 : index
    %39 = vector.load %arg3[%c0_18, %c0_19] : memref<128x128xf32, #tpu.memory_space<vmem>>, vector<128x128xf32>
    %cst_20 = arith.constant dense<0.000000e+00> : vector<16x128xf32>
    %40 = tpu.matmul %38, %39, %cst_20 {dimension_numbers = #tpu.dot_dimension_numbers<[1], [0], [0], [1], [0, 0, 1, 1], [], []>} : vector<16x128xf32>, vector<128x128xf32>, vector<16x128xf32> -> vector<16x128xf32>
    %41 = vector.broadcast %3 : vector<1x128xf32> to vector<16x128xf32>
    %42 = arith.addf %40, %41 : vector<16x128xf32>
    %cst_21 = arith.constant dense<0.000000e+00> : vector<16xf32>
    %43 = vector.multi_reduction <add>, %42, %cst_21 [1] : vector<16x128xf32> to vector<16xf32>
    %44 = vector.shape_cast %43 : vector<16xf32> to vector<16x1xf32>
    %cst_22 = arith.constant 7.812500e-03 : f32
    %45 = vector.broadcast %cst_22 : f32 to vector<16x1xf32>
    %46 = arith.mulf %44, %45 : vector<16x1xf32>
    %47 = vector.broadcast %46 : vector<16x1xf32> to vector<16x128xf32>
    %48 = arith.subf %42, %47 : vector<16x128xf32>
    %49 = arith.mulf %48, %48 : vector<16x128xf32>
    %cst_23 = arith.constant dense<0.000000e+00> : vector<16xf32>
    %50 = vector.multi_reduction <add>, %49, %cst_23 [1] : vector<16x128xf32> to vector<16xf32>
    %51 = vector.shape_cast %50 : vector<16xf32> to vector<16x1xf32>
    %cst_24 = arith.constant 7.812500e-03 : f32
    %52 = vector.broadcast %cst_24 : f32 to vector<16x1xf32>
    %53 = arith.mulf %51, %52 : vector<16x1xf32>
    %cst_25 = arith.constant 9.99999974E-6 : f32
    %54 = vector.broadcast %cst_25 : f32 to vector<16x1xf32>
    %55 = arith.addf %53, %54 : vector<16x1xf32>
    %56 = math.rsqrt %55 : vector<16x1xf32>
    %57 = vector.broadcast %56 : vector<16x1xf32> to vector<16x128xf32>
    %58 = arith.mulf %48, %57 : vector<16x128xf32>
    %59 = vector.broadcast %4 : vector<1x128xf32> to vector<16x128xf32>
    %60 = arith.mulf %58, %59 : vector<16x128xf32>
    %61 = vector.broadcast %5 : vector<1x128xf32> to vector<16x128xf32>
    %62 = arith.addf %60, %61 : vector<16x128xf32>
    %63 = arith.addf %62, %6 : vector<16x128xf32>
    %cst_26 = arith.constant 5.000000e-01 : f32
    %64 = vector.broadcast %cst_26 : f32 to vector<16x128xf32>
    %65 = arith.mulf %64, %63 : vector<16x128xf32>
    %cst_27 = arith.constant 0.707106769 : f32
    %66 = vector.broadcast %cst_27 : f32 to vector<16x128xf32>
    %67 = arith.mulf %63, %66 : vector<16x128xf32>
    %68 = math.erf %67 : vector<16x128xf32>
    %cst_28 = arith.constant 1.000000e+00 : f32
    %69 = vector.broadcast %cst_28 : f32 to vector<16x128xf32>
    %70 = arith.addf %69, %68 : vector<16x128xf32>
    %71 = arith.mulf %65, %70 : vector<16x128xf32>
    %c0_29 = arith.constant 0 : index
    %c0_30 = arith.constant 0 : index
    %72 = vector.load %arg5[%c0_29, %c0_30] : memref<16x128xf32, #tpu.memory_space<vmem>>, vector<16x128xf32>
    tpu.vector_store %arg5[%c0_29, %c0_30], %71 {strides = array<i32>} : memref<16x128xf32, #tpu.memory_space<vmem>>, vector<16x128xf32>,
    return
  }
  func.func @transform_0(%arg0: i32) -> (i32, i32) {
    %c0_i32 = arith.constant 0 : i32
    %c0_i32_0 = arith.constant 0 : i32
    return %arg0, %c0_i32 : i32, i32
  }
  func.func @transform_1(%arg0: i32) -> (i32, i32) {
    %c0_i32 = arith.constant 0 : i32
    %c0_i32_0 = arith.constant 0 : i32
    %c0_i32_1 = arith.constant 0 : i32
    return %c0_i32, %c0_i32_0 : i32, i32
  }
  func.func @transform_2(%arg0: i32) -> (i32, i32) {
    %c0_i32 = arith.constant 0 : i32
    %c0_i32_0 = arith.constant 0 : i32
    %c0_i32_1 = arith.constant 0 : i32
    return %c0_i32, %c0_i32_0 : i32, i32
  }
  func.func @transform_3(%arg0: i32) -> (i32, i32) {
    %c0_i32 = arith.constant 0 : i32
    %c0_i32_0 = arith.constant 0 : i32
    %c0_i32_1 = arith.constant 0 : i32
    return %c0_i32, %c0_i32_0 : i32, i32
  }
  func.func @transform_4(%arg0: i32) -> (i32, i32) {
    %c0_i32 = arith.constant 0 : i32
    %c0_i32_0 = arith.constant 0 : i32
    return %arg0, %c0_i32 : i32, i32
  }
}

</mosaic_0001>

<bundles_post_ra>
// kernel: residual_block.1
= control target key start
LH: loop header
LB: loop body
LE: loop exit
PB: predicated region body
PF: predicated region fallthrough
CT: control target
= control target key end

     0   :  { %9 = vsyncpa [#allocation3], 0  ;;  %s783_s0 = inlined_call_operand.hbm [shape: f32[16,128], index: 0, kind: input, shape index: {}]   ;;  %s784_s1 = inlined_call_operand.hbm [shape: f32[128,128], index: 1, kind: input, shape index: {}]   ;;  %s785_s2 = inlined_call_operand.hbm [shape: f32[128,128], index: 2, kind: input, shape index: {}]   ;;  %s786_s3 = inlined_call_operand.vmem [shape: f32[8,128], index: 3, kind: input, shape index: {}]   ;;  %s787_s4 = inlined_call_operand.hbm [shape: f32[16,128], index: 4, kind: output, shape index: {}]  }
   0x1   :  { %10 = vsyncpa [#allocation6], 0 }
   0x2   :  { %11 = vsyncpa [#allocation4], 0  ;;  %s659_s15 = smov [#allocation5]   ;;  %s660_s17 = smov [#allocation2]  }
   0x3   :  { %s29_s16 = sshll.u32 %s659_s15, 4  ;;  %s17_s18 = sshll.u32 %s660_s17, 4  ;;  %s30_s16 = int_to_ptr.vmem [resolvable:$true] %s29_s16  ;;  %s690_s18 = int_to_ptr.vmem [resolvable:$true] %s17_s18 }
   0x4   :  { %s565_s21 = scalar_lea.hbm %s784_s1, 2048 }
   0x5   :  { %p566_p0 = scmp.ne.s32.totalorder %s784_s1, %s565_s21  ;;  %p569_p1 = scmp.lt.u32.totalorder %s565_s21, %s784_s1 }
   0x7   :  { %p571_p2 = pnand %p569_p1, %p566_p0 }
   0x9   :  { %574 = shalt.err (!%p571_p2)
}
   0xa   :  { %s575_s26 = scalar_lea.vmem %s30_s16, 2048  ;;  %p580_p4 = scmp.lt.s32.totalorder %s30_s16, %s30_s16 }
   0xb   :  { %p576_p3 = scmp.ne.s32.totalorder %s30_s16, %s575_s26  ;;  %p581_p5 = scmp.lt.s32.totalorder %s575_s26, %s575_s26 }
   0xd   :  { %p582_p6 = por %p581_p5, %p580_p4 }
   0xf   :  { %p583_p7 = pnand %p582_p6, %p576_p3 }
  0x11   :  { %586 = shalt.err (!%p583_p7)
}
  0x12   :  { %s661_s27 = smov 128   ;;  %s662_s28 = smov 8  }
  0x13   :  { %35 = dma.hbm_to_vmem [thread:$0]  %s784_s1, 2048, %s30_s16, [#allocation6], %s661_s27, %s661_s27, %s662_s28  }
  0x14   :  { %s587_s7 = scalar_lea.hbm %s783_s0, 256 }
  0x15   :  { %p588_p8 = scmp.ne.s32.totalorder %s783_s0, %s587_s7  ;;  %p591_p9 = scmp.lt.u32.totalorder %s587_s7, %s783_s0 }
  0x17   :  { %p593_p10 = pnand %p591_p9, %p588_p8 }
  0x19   :  { %596 = shalt.err (!%p593_p10)
}
  0x1a   :  { %s597_s12 = scalar_lea.vmem %s690_s18, 256  ;;  %p602_p12 = scmp.lt.s32.totalorder %s690_s18, %s690_s18 }
  0x1b   :  { %p598_p11 = scmp.ne.s32.totalorder %s690_s18, %s597_s12  ;;  %p603_p13 = scmp.lt.s32.totalorder %s597_s12, %s597_s12 }
  0x1d   :  { %p604_p0 = por %p603_p13, %p602_p12 }
  0x1f   :  { %p605_p1 = pnand %p604_p0, %p598_p11 }
  0x21   :  { %608 = shalt.err (!%p605_p1)
}
  0x22   :  { %23 = dma.hbm_to_vmem [thread:$0]  %s783_s0, 256, %s690_s18, [#allocation3], %s661_s27, %s661_s27, %s662_s28  }
  0x23   :  { %s663_s14 = smov [#allocation7]   ;;  %s609_s19 = scalar_lea.hbm %s785_s2, 2048 }
  0x24   :  { %s41_s15 = sshll.u32 %s663_s14, 4  ;;  %p610_p2 = scmp.ne.s32.totalorder %s785_s2, %s609_s19  ;;  %s42_s15 = int_to_ptr.vmem [resolvable:$true] %s41_s15 }
  0x25   :  { %p613_p3 = scmp.lt.u32.totalorder %s609_s19, %s785_s2 }
  0x27   :  { %p615_p4 = pnand %p613_p3, %p610_p2 }
  0x29   :  { %618 = shalt.err (!%p615_p4)
}
  0x2a   :  { %s619_s24 = scalar_lea.vmem %s42_s15, 2048  ;;  %p624_p6 = scmp.lt.s32.totalorder %s42_s15, %s42_s15 }
  0x2b   :  { %p620_p5 = scmp.ne.s32.totalorder %s42_s15, %s619_s24  ;;  %p625_p7 = scmp.lt.s32.totalorder %s619_s24, %s619_s24 }
  0x2d   :  { %p626_p8 = por %p625_p7, %p624_p6 }
  0x2f   :  { %p627_p9 = pnand %p626_p8, %p620_p5 }
  0x31   :  { %630 = shalt.err (!%p627_p9)
}
  0x32   :  { %47 = dma.hbm_to_vmem [thread:$0]  %s785_s2, 2048, %s42_s15, [#allocation6], %s661_s27, %s661_s27, %s662_s28  }
  0x33   :  { %653 = dma.done.wait [#allocation3], 256  }
  0x34   :  { %654 = vsyncadd [#allocation3], 4294967040 }
  0x35   :  { %655 = dma.done.wait [#allocation6], 4096  }
  0x36   :  { %656 = vsyncadd [#allocation6], 4294963200  ;;  %v67_v0 = vld [vmem:[#allocation5] sm:$0xff]  ;;  %v68_v1 = vld [vmem:[#allocation5 + $0x8] sm:$0xff]  ;;  %s664_s12 = smov [#allocation8]  }
  0x37   :  { %v69_v2 = vld [vmem:[#allocation5 + $0x10] sm:$0xff]  ;;  %v479_v3 = vpack.c.bf16 %v68_v1, %v67_v0  ;;  %v70_v4 = vld [vmem:[#allocation5 + $0x18] sm:$0xff]  ;;  %v71_v6 = vld [vmem:[#allocation5 + $0x20] sm:$0xff]  ;;  %s354_s1 = sshll.u32 %s664_s12, 4  ;;  %s355_s1 = int_to_ptr.vmem [resolvable:$true] %s354_s1 }
  0x38   :  { %v483_v5 = vpack.c.bf16 %v70_v4, %v69_v2  ;;  %v72_v7 = vld [vmem:[#allocation5 + $0x28] sm:$0xff]  ;;  %v742_v9 = vld [vmem:[#allocation2] sm:$0xff]  ;;  %v74_v11 = vld [vmem:[#allocation5 + $0x38] sm:$0xff]  ;;  %p636_p11 = scmp.lt.s32.totalorder %s355_s1, %s355_s1 }
  0x39   :  { %480 = vmatprep.subr.bf16.mxu0 %v479_v3  ;;  %v487_v8 = vpack.c.bf16 %v72_v7, %v71_v6  ;;  %v73_v10 = vld [vmem:[#allocation5 + $0x30] sm:$0xff]  ;;  %441 = vmatprep.mubr.f32.mxu0 %v742_v9  ;;  %v75_v13 = vld [vmem:[#allocation5 + $0x40] sm:$0xff]  ;;  %v76_v14 = vld [vmem:[#allocation5 + $0x48] sm:$0xff] }
  0x3a   :  { %482 = vmatpush3.bf16.msra.mxu0 %v479_v3  ;;  %v491_v12 = vpack.c.bf16 %v74_v11, %v73_v10  ;;  %v495_v15 = vpack.c.bf16 %v76_v14, %v75_v13  ;;  %v77_v16 = vld [vmem:[#allocation5 + $0x50] sm:$0xff]  ;;  %v78_v17 = vld [vmem:[#allocation5 + $0x58] sm:$0xff]  ;;  %v79_v19 = vld [vmem:[#allocation5 + $0x60] sm:$0xff] }
  0x3b   :  { %484 = vmatprep.subr.bf16.mxu0 %v483_v5  ;;  %v499_v18 = vpack.c.bf16 %v78_v17, %v77_v16  ;;  %v80_v20 = vld [vmem:[#allocation5 + $0x68] sm:$0xff]  ;;  %v81_v22 = vld [vmem:[#allocation5 + $0x70] sm:$0xff]  ;;  %v82_v23 = vld [vmem:[#allocation5 + $0x78] sm:$0xff] }
  0x3c   :  { %v503_v21 = vpack.c.bf16 %v80_v20, %v79_v19  ;;  %v507_v24 = vpack.c.bf16 %v82_v23, %v81_v22  ;;  %v745_v25 = vld [vmem:[#allocation2 + $0x8] sm:$0xff]  ;;  %v367_v26 = vld [vmem:[%s786_s3] ss:$0 sm:$0xff]  ;;  %v206_v39 = vld [vmem:[#allocation7] sm:$0xff] }
  0x3d   :  { %v207_v40 = vld [vmem:[#allocation7 + $0x8] sm:$0xff]  ;;  %v208_v42 = vld [vmem:[#allocation7 + $0x10] sm:$0xff]  ;;  %v209_v43 = vld [vmem:[#allocation7 + $0x18] sm:$0xff] }
  0x3e   :  { %486 = vmatpush3.bf16.msra.mxu0 %v483_v5  ;;  %v511_v41 = vpack.c.bf16 %v207_v40, %v206_v39  ;;  %v515_v44 = vpack.c.bf16 %v209_v43, %v208_v42  ;;  %v210_v45 = vld [vmem:[#allocation7 + $0x20] sm:$0xff]  ;;  %v211_v46 = vld [vmem:[#allocation7 + $0x28] sm:$0xff]  ;;  %v212_v48 = vld [vmem:[#allocation7 + $0x30] sm:$0xff] }
  0x3f   :  { %488 = vmatprep.subr.bf16.mxu0 %v487_v8  ;;  %v519_v47 = vpack.c.bf16 %v211_v46, %v210_v45  ;;  %v213_v49 = vld [vmem:[#allocation7 + $0x38] sm:$0xff]  ;;  %v214_v51 = vld [vmem:[#allocation7 + $0x40] sm:$0xff]  ;;  %v215_v52 = vld [vmem:[#allocation7 + $0x48] sm:$0xff] }
  0x40   :  { %512 = vmatprep.subr.bf16.mxu1 %v511_v41  ;;  %v523_v50 = vpack.c.bf16 %v213_v49, %v212_v48  ;;  %v527_v53 = vpack.c.bf16 %v215_v52, %v214_v51  ;;  %v216_v54 = vld [vmem:[#allocation7 + $0x50] sm:$0xff]  ;;  %v217_v55 = vld [vmem:[#allocation7 + $0x58] sm:$0xff]  ;;  %v218_v57 = vld [vmem:[#allocation7 + $0x60] sm:$0xff] }
  0x41   :  { %514 = vmatpush3.bf16.msra.mxu1 %v511_v41  ;;  %v531_v56 = vpack.c.bf16 %v217_v55, %v216_v54  ;;  %v219_v58 = vld [vmem:[#allocation7 + $0x68] sm:$0xff]  ;;  %v220_v60 = vld [vmem:[#allocation7 + $0x70] sm:$0xff]  ;;  %v221_v61 = vld [vmem:[#allocation7 + $0x78] sm:$0xff] }
  0x42   :  { %490 = vmatpush3.bf16.msra.mxu0 %v487_v8  ;;  %516 = vmatprep.subr.bf16.mxu1 %v515_v44  ;;  %v535_v59 = vpack.c.bf16 %v219_v58, %v218_v57  ;;  %v539_v62 = vpack.c.bf16 %v221_v61, %v220_v60  ;;  %v368_v6 = vld [vmem:[%s786_s3 + $0x1] ss:$0 sm:$0xff]  ;;  %v369_v8 = vld [vmem:[%s786_s3 + $0x2] ss:$0 sm:$0xff]  ;;  %v372_v51 = vld [vmem:[%s786_s3 + $0x5] ss:$0 sm:$0xff] }
  0x43   :  { %492 = vmatprep.subr.bf16.mxu0 %v491_v12 }
  0x45   :  { %518 = vmatpush3.bf16.msra.mxu1 %v515_v44 }
  0x46   :  { %494 = vmatpush3.bf16.msra.mxu0 %v491_v12  ;;  %520 = vmatprep.subr.bf16.mxu1 %v519_v47 }
  0x47   :  { %496 = vmatprep.subr.bf16.mxu0 %v495_v15 }
  0x49   :  { %522 = vmatpush3.bf16.msra.mxu1 %v519_v47  ;;  %v371_v47 = vld [vmem:[%s786_s3 + $0x4] ss:$0 sm:$0xff] }
  0x4a   :  { %498 = vmatpush3.bf16.msra.mxu0 %v495_v15  ;;  %524 = vmatprep.subr.bf16.mxu1 %v523_v50 }
  0x4b   :  { %500 = vmatprep.subr.bf16.mxu0 %v499_v18 }
  0x4d   :  { %526 = vmatpush3.bf16.msra.mxu1 %v523_v50 }
  0x4e   :  { %502 = vmatpush3.bf16.msra.mxu0 %v499_v18  ;;  %528 = vmatprep.subr.bf16.mxu1 %v527_v53 }
  0x4f   :  { %504 = vmatprep.subr.bf16.mxu0 %v503_v21 }
  0x51   :  { %530 = vmatpush3.bf16.msra.mxu1 %v527_v53 }
  0x52   :  { %506 = vmatpush3.bf16.msra.mxu0 %v503_v21  ;;  %532 = vmatprep.subr.bf16.mxu1 %v531_v56 }
  0x53   :  { %508 = vmatprep.subr.bf16.mxu0 %v507_v24 }
  0x55   :  { %534 = vmatpush3.bf16.msra.mxu1 %v531_v56 }
  0x56   :  { %510 = vmatpush3.bf16.msra.mxu0 %v507_v24  ;;  %536 = vmatprep.subr.bf16.mxu1 %v535_v59 }
  0x59   :  { %442 = vmatmul.mubr.f32.vlgmr.msra.gmra.mrb[0].mxu0 %v745_v25  ;;  %538 = vmatpush3.bf16.msra.mxu1 %v535_v59 }
  0x5a   :  { %540 = vmatprep.subr.bf16.mxu1 %v539_v62 }
  0x5d   :  { %542 = vmatpush3.bf16.msra.mxu1 %v539_v62 }
 0x12c   :  { %v443_v27 = vpop.f32.mrb[0].mxu0 }
 0x12d   :  { %v153_v28 = vpop.f32.mrb[1].mxu0  ;;  %v159_v30 = vadd.f32 %v443_v27, %v367_v26  ;;  %v370_v27 = vld [vmem:[%s786_s3 + $0x3] ss:$0 sm:$0xff]  ;;  %s631_s3 = scalar_lea.vmem %s355_s1, 256 }
 0x12e   :  { %v154_v29 = vadd.f32 %v367_v26, %v153_v28  ;;  %p632_p10 = scmp.ne.s32.totalorder %s355_s1, %s631_s3  ;;  %p637_p12 = scmp.lt.s32.totalorder %s631_s3, %s631_s3 }
 0x130   :  { %162 = vadd.xlane.f32.xlu0 %v154_v29  ;;  %p638_p13 = por %p637_p12, %p636_p11 }
 0x132   :  { %p639_p0 = pnand %p638_p13, %p632_p10 }
 0x134   :  { %164 = vadd.xlane.f32.xlu0 %v159_v30 }
 0x1bd   :  { %v163_v31 = vpop.xlane.xlu0 %162 }
 0x1be   :  { %v166_v32 = vmul.f32 0.0078125, %v163_v31 }
 0x1c0   :  { %v168_v33 = vsub.f32 %v154_v29, %v166_v32 }
 0x1c1   :  { %v165_v34 = vpop.xlane.xlu0 %164 }
 0x1c2   :  { %v167_v35 = vmul.f32 0.0078125, %v165_v34  ;;  %v170_v36 = vmul.f32 %v168_v33, %v168_v33 }
 0x1c4   :  { %v169_v37 = vsub.f32 %v159_v30, %v167_v35  ;;  %172 = vadd.xlane.f32.xlu1 %v170_v36 }
 0x1c6   :  { %v171_v38 = vmul.f32 %v169_v37, %v169_v37 }
 0x1c8   :  { %174 = vadd.xlane.f32.xlu1 %v171_v38 }
 0x251   :  { %v173_v63 = vpop.xlane.xlu1 %172 }
 0x252   :  { %v176_v0 = vmul.f32 0.0078125, %v173_v63 }
 0x254   :  { %v178_v1 = vadd.f32 1e-05, %v176_v0 }
 0x255   :  { %v175_v2 = vpop.xlane.xlu1 %174 }
 0x256   :  { %549 = vrsqrt.f32 %v178_v1  ;;  %v177_v3 = vmul.f32 0.0078125, %v175_v2 }
 0x258   :  { %v179_v4 = vadd.f32 1e-05, %v177_v3 }
 0x25a   :  { %551 = vrsqrt.f32 %v179_v4 }
 0x260   :  { %v550_v5 = vpop.eup %549 }
 0x261   :  { %v182_v7 = vmul.f32 %v550_v5, %v168_v33 }
 0x263   :  { %v188_v10 = vmul.f32 %v368_v6, %v182_v7 }
 0x264   :  { %v552_v11 = vpop.eup %551 }
 0x265   :  { %v183_v12 = vmul.f32 %v552_v11, %v169_v37  ;;  %v194_v13 = vadd.f32 %v369_v8, %v188_v10 }
 0x267   :  { %v189_v14 = vmul.f32 %v368_v6, %v183_v12  ;;  %v198_v15 = vmul.f32 0.70710677, %v194_v13  ;;  %v196_v19 = vmul.f32 0.5, %v194_v13 }
 0x269   :  { %v195_v16 = vadd.f32 %v369_v8, %v189_v14  ;;  %553 = verf.f32 %v198_v15 }
 0x26b   :  { %v199_v17 = vmul.f32 0.70710677, %v195_v16  ;;  %v197_v23 = vmul.f32 0.5, %v195_v16 }
 0x26d   :  { %555 = verf.f32 %v199_v17 }
 0x273   :  { %v554_v18 = vpop.eup %553 }
 0x274   :  { %v202_v20 = vadd.f32 1.0, %v554_v18 }
 0x276   :  { %v204_v21 = vmul.f32 %v202_v20, %v196_v19 }
 0x277   :  { %v556_v22 = vpop.eup %555 }
 0x278   :  { %476 = vmatprep.mubr.f32.mxu1 %v204_v21  ;;  %v203_v24 = vadd.f32 1.0, %v556_v22 }
 0x27a   :  { %v205_v26 = vmul.f32 %v203_v24, %v197_v23 }
 0x27c   :  { %477 = vmatmul.mubr.f32.vlgmr.msra.gmra.mrb[0].mxu1 %v205_v26 }
 0x34f   :  { %v478_v28 = vpop.f32.mrb[0].mxu1 }
 0x350   :  { %v298_v29 = vadd.f32 %v478_v28, %v370_v27  ;;  %v292_v30 = vpop.f32.mrb[1].mxu1 }
 0x351   :  { %v293_v31 = vadd.f32 %v370_v27, %v292_v30 }
 0x352   :  { %303 = vadd.xlane.f32.xlu1 %v298_v29 }
 0x353   :  { %301 = vadd.xlane.f32.xlu0 %v293_v31 }
 0x3df   :  { %v304_v32 = vpop.xlane.xlu1 %303 }
 0x3e0   :  { %v306_v33 = vmul.f32 0.0078125, %v304_v32  ;;  %v302_v34 = vpop.xlane.xlu0 %301 }
 0x3e1   :  { %v305_v35 = vmul.f32 0.0078125, %v302_v34 }
 0x3e2   :  { %v308_v36 = vsub.f32 %v298_v29, %v306_v33 }
 0x3e3   :  { %v307_v37 = vsub.f32 %v293_v31, %v305_v35 }
 0x3e4   :  { %v310_v38 = vmul.f32 %v308_v36, %v308_v36 }
 0x3e5   :  { %v309_v39 = vmul.f32 %v307_v37, %v307_v37 }
 0x3e6   :  { %313 = vadd.xlane.f32.xlu1 %v310_v38 }
 0x3e7   :  { %311 = vadd.xlane.f32.xlu0 %v309_v39 }
 0x473   :  { %v314_v40 = vpop.xlane.xlu1 %313 }
 0x474   :  { %v316_v41 = vmul.f32 0.0078125, %v314_v40  ;;  %v312_v42 = vpop.xlane.xlu0 %311 }
 0x475   :  { %v315_v43 = vmul.f32 0.0078125, %v312_v42 }
 0x476   :  { %v318_v44 = vadd.f32 1e-05, %v316_v41 }
 0x477   :  { %v317_v45 = vadd.f32 1e-05, %v315_v43 }
 0x478   :  { %557 = vrsqrt.f32 %v318_v44 }
 0x479   :  { %559 = vrsqrt.f32 %v317_v45 }
 0x482   :  { %v558_v46 = vpop.eup %557 }
 0x483   :  { %v560_v48 = vpop.eup %559  ;;  %v322_v49 = vmul.f32 %v558_v46, %v308_v36 }
 0x484   :  { %v321_v50 = vmul.f32 %v560_v48, %v307_v37 }
 0x485   :  { %v328_v52 = vmul.f32 %v371_v47, %v322_v49 }
 0x486   :  { %v327_v53 = vmul.f32 %v371_v47, %v321_v50 }
 0x487   :  { %v334_v54 = vadd.f32 %v372_v51, %v328_v52 }
 0x488   :  { %v333_v55 = vadd.f32 %v372_v51, %v327_v53 }
 0x489   :  { %v336_v56 = vadd.f32 %v334_v54, %v745_v25 }
 0x48a   :  { %v335_v57 = vadd.f32 %v333_v55, %v742_v9 }
 0x48b   :  { %v340_v58 = vmul.f32 0.70710677, %v336_v56  ;;  %v338_v62 = vmul.f32 0.5, %v336_v56 }
 0x48c   :  { %v339_v59 = vmul.f32 0.70710677, %v335_v57  ;;  %v337_v0 = vmul.f32 0.5, %v335_v57 }
 0x48d   :  { %561 = verf.f32 %v340_v58 }
 0x48e   :  { %563 = verf.f32 %v339_v59 }
 0x497   :  { %v562_v60 = vpop.eup %561 }
 0x498   :  { %v564_v61 = vpop.eup %563  ;;  %v344_v63 = vadd.f32 1.0, %v562_v60 }
 0x499   :  { %v343_v1 = vadd.f32 1.0, %v564_v61 }
 0x49a   :  { %v346_v2 = vmul.f32 %v344_v63, %v338_v62 }
 0x49b   :  { %v345_v3 = vmul.f32 %v343_v1, %v337_v0 }
 0x49c   :  { %348 = vst [vmem:[#allocation8 + $0x8] sm:$0xff] %v346_v2 }
 0x49d   :  { %347 = vst [vmem:[#allocation8] sm:$0xff] %v345_v3 }
 0x49e   :  { %642 = shalt.err (!%p639_p0)
}
 0x49f   :  { %s643_s15 = scalar_lea.hbm %s787_s4, 256 }
 0x4a0   :  { %p644_p1 = scmp.ne.s32.totalorder %s787_s4, %s643_s15  ;;  %p647_p2 = scmp.lt.u32.totalorder %s643_s15, %s787_s4 }
 0x4a2   :  { %p649_p3 = pnand %p647_p2, %p644_p1 }
 0x4a4   :  { %652 = shalt.err (!%p649_p3)
}
 0x4a5   :  { %360 = dma.vmem_to_hbm [thread:$0]  %s355_s1, 256, %s787_s4, [#allocation4], %s661_s27, %s661_s27, %s662_s28  }
 0x4a6   :  { %657 = dma.done.wait [#allocation4], 256  }
 0x4a7   :  { %658 = vsyncadd [#allocation4], 4294967040 }
 0x4a8   :  { %364 = vsyncpa [#allocation3], 1 }
 0x4a9   :  { %365 = vsyncpa [#allocation6], 1 }
 0x4aa   :  { %366 = vsyncpa [#allocation4], 1 }

</bundles_post_ra>
